<compile_context>
chip_gen: v5e
topology: v5e:2x2
jax: 0.10.0
libtpu: 0.0.40
codegen_flags: <defaults>
</compile_context>

<pallas_src>
import math

import jax
import jax.numpy as jnp
from jax.experimental import pallas as pl
from jax.experimental.pallas import tpu as pltpu


# ----------------------------- Pallas kernel --------------------------------

def _fused_affine_kernel(x_ref, w_ref, b_ref, out_ref):
    # One batch tile per grid step:  y = x @ W + b  (bf16 operands, f32 acc).
    y = jnp.dot(x_ref[...], w_ref[...], preferred_element_type=jnp.float32)
    out_ref[...] = (y + b_ref[...]).astype(out_ref.dtype)


# ------------------------- one-time weight folding ---------------------------

def prepare_fused_params(params):
    """Fold fc_num -> core.fc -> out.fc into one (W_f, b_f). Call once.

    Hoists the PyTorch [out,in] -> [in,out] transposes, the W1[:Dc]/W1[Dc:]
    row split and all bias folding out of the per-call path. Folding is done
    in f32 at HIGHEST precision; the streamed weight is stored as bf16 (the
    in-kernel dot accumulates in f32 on the MXU).
    """
    hp = jax.lax.Precision.HIGHEST

    Wnum = params["fc_num_w"].T            # [Dn, Dn]
    bnum = params["fc_num_b"]              # [Dn]
    W1 = params["core_w"].T                # [D, D]
    b1 = params["core_b"]                  # [D]
    W2 = params["out_w"].T                 # [D, Do]   (OutputModule.fc)
    b2 = params["out_b"]                   # [Do]

    Dn = Wnum.shape[0]
    D = W1.shape[0]
    Dc = D - Dn

    W1c, W1n = W1[:Dc, :], W1[Dc:, :]
    Wc_f = jnp.dot(W1c, W2, precision=hp)                                  # [Dc, Do]
    Wn_f = jnp.dot(Wnum, jnp.dot(W1n, W2, precision=hp), precision=hp)     # [Dn, Do]
    b_f = jnp.dot(jnp.dot(bnum, W1n, precision=hp) + b1, W2, precision=hp) + b2  # [Do]

    # Single fused weight for one MXU dot over the concatenated features.
    W_f = jnp.concatenate([Wc_f, Wn_f], axis=0).astype(jnp.bfloat16)       # [Dc+Dn, Do]
    b_f = b_f.reshape(1, -1).astype(jnp.float32)                           # [1, Do]
    return W_f, b_f


# ------------------------------- wrapper -------------------------------------

def _pick_batch_tile(B, b_tile):
    """Large tiles to amortize per-step overhead, but keep >=2 grid steps when
    B allows (so dimension_semantics=('parallel',) shards across both TCs on v7x)."""
    if B <= 8:
        return B
    half = ((pl.cdiv(B, 2) + 7) // 8) * 8   # cdiv(B,2) rounded up to sublane mult.
    return max(8, min(b_tile, half))


def passive_model_pallas(features, w_fused, b_fused, *, b_tile=4096):
    """features: [B, Dc+Dn] bf16 (concatenated cate embeddings + raw numericals),
    (w_fused, b_fused) from prepare_fused_params(). Returns [B, Do] f32."""
    B, Din = features.shape
    Do = w_fused.shape[1]

    bt = _pick_batch_tile(B, b_tile)
    grid = (pl.cdiv(B, bt),)

    cost = pl.CostEstimate(
        flops=2 * B * Din * Do,
        transcendentals=0,
        bytes_accessed=B * Din * 2 + Din * Do * 2 + Do * 4 + B * Do * 4,
    )

    return pl.pallas_call(
        _fused_affine_kernel,
        out_shape=jax.ShapeDtypeStruct((B, Do), jnp.float32),
        grid=grid,
        in_specs=[
            pl.BlockSpec((bt, Din), lambda i: (i, 0)),    # activation tile (bf16)
            pl.BlockSpec((Din, Do), lambda i: (0, 0)),    # fused weight, resident
            pl.BlockSpec((1, Do), lambda i: (0, 0)),      # fused bias, resident
        ],
        out_specs=pl.BlockSpec((bt, Do), lambda i: (i, 0)),
        compiler_params=pltpu.CompilerParams(
            dimension_semantics=("parallel",)),           # batch sharded across TCs
        cost_estimate=cost,
    )(features, w_fused, b_fused)


# --------------------------- params / reference ------------------------------

def init_params(key, vocab_sizes, dim_numerical, emb_dim=5):
    """Deterministic synthetic parameters matching the module's __init__ shapes."""
    Dc = emb_dim * len(vocab_sizes)
    D = Dc + dim_numerical
    Do = math.ceil(D / 2)
    keys = jax.random.split(key, 8 + len(vocab_sizes))
    params = {}
    emb = {}
    for i, (name, vs) in enumerate(vocab_sizes.items()):
        emb[name] = jax.random.normal(keys[i], (vs, emb_dim), jnp.float32) * 0.1
    params["embeddings"] = emb
    k = len(vocab_sizes)
    # fc_num: Linear(Dn, Dn)
    params["fc_num_w"] = jax.random.normal(keys[k + 0], (dim_numerical, dim_numerical), jnp.float32) * 0.2
    params["fc_num_b"] = jax.random.normal(keys[k + 1], (dim_numerical,), jnp.float32) * 0.1
    # CoreModule.fc: Linear(D, D)
    params["core_w"] = jax.random.normal(keys[k + 2], (D, D), jnp.float32) * 0.1
    params["core_b"] = jax.random.normal(keys[k + 3], (D,), jnp.float32) * 0.1
    # OutputModule.fc: Linear(D, ceil(D/2))
    params["out_w"] = jax.random.normal(keys[k + 4], (Do, D), jnp.float32) * 0.1
    params["out_b"] = jax.random.normal(keys[k + 5], (Do,), jnp.float32) * 0.1
    return params


def reference_forward(cate_data, num_data, params, cate_order, num_order):
    # pure-JAX reference of PassiveModel.forward (sequential Linears)
    embeds = [params["embeddings"][name][cate_data[name]] for name in cate_order]
    cate_cat = jnp.concatenate(embeds, axis=1)
    num_cat = jnp.concatenate([num_data[n] for n in num_order], axis=1).astype(jnp.float32)
    num_out = num_cat @ params["fc_num_w"].T + params["fc_num_b"]
    x = jnp.concatenate([cate_cat, num_out], axis=1)
    h = x @ params["core_w"].T + params["core_b"]
    return h @ params["out_w"].T + params["out_b"]


# ---------------------------------- demo --------------------------------------

if __name__ == "__main__":
    key = jax.random.PRNGKey(0)
    B = 8
    emb_dim = 5
    vocab_sizes = {"cate_a": 7, "cate_b": 11, "cate_c": 13}     # 3 categorical feats -> Dc=15
    num_feature_widths = {"num_x": 2, "num_y": 2}               # dim_numerical = 4
    dim_numerical = sum(num_feature_widths.values())

    params = init_params(key, vocab_sizes, dim_numerical, emb_dim)

    k1, k2 = jax.random.split(jax.random.PRNGKey(1))
    cate_data = {}
    for i, (name, vs) in enumerate(vocab_sizes.items()):
        cate_data[name] = jax.random.randint(
            jax.random.fold_in(k1, i), (B,), 0, vs, dtype=jnp.int32)
    num_data = {}
    for i, (name, w) in enumerate(num_feature_widths.items()):
        num_data[name] = jax.random.normal(
            jax.random.fold_in(k2, i), (B, w), jnp.float32)

    cate_order = list(vocab_sizes.keys())
    num_order = list(num_feature_widths.keys())

    # Glue: embedding lookups + feature concatenation (plain JAX, data-dependent
    # gather). Single [B, Dc+Dn] bf16 activation slab for the one-dot kernel.
    cate_emb = jnp.concatenate(
        [params["embeddings"][name][cate_data[name]] for name in cate_order], axis=1)
    num_concat = jnp.concatenate(
        [num_data[n] for n in num_order], axis=1).astype(jnp.float32)
    features = jnp.concatenate([cate_emb, num_concat], axis=1).astype(jnp.bfloat16)

    # One-time weight folding (hoisted out of the per-call path).
    w_f, b_f = prepare_fused_params(params)
    w_f, b_f = jax.block_until_ready((w_f, b_f))

    out = passive_model_pallas(features, w_f, b_f)
    out = jax.block_until_ready(out)

    ref = reference_forward(cate_data, num_data, params, cate_order, num_order)
    assert out.shape == ref.shape, (out.shape, ref.shape)
    # Tolerance covers bf16 quantization of the streamed activations/weights,
    # MXU bf16-pass rounding, and re-association from the offline constant
    # folding of the three Linear layers.
    assert jnp.allclose(out, ref, atol=2e-3, rtol=2e-3), (
        "mismatch vs reference, max abs diff = %s" % float(jnp.max(jnp.abs(out - ref))))

    print("KERNEL_OK")
</pallas_src>

<mosaic_0001>
module attributes {stable_mosaic.version = 11 : i64} {
  func.func @_fused_affine_kernel(%arg0: i32, %arg1: memref<8x19xbf16, #tpu.memory_space<vmem>>, %arg2: memref<19x10xbf16, #tpu.memory_space<vmem>>, %arg3: memref<1x10xf32, #tpu.memory_space<vmem>>, %arg4: memref<8x10xf32, #tpu.memory_space<vmem>>) attributes {dimension_semantics = [#tpu.dimension_semantics<parallel>], iteration_bounds = array<i64: 1>, scalar_prefetch = 0 : i64, scratch_operands = 0 : i64, tpu.core_type = #tpu.core_type<tc>, window_params = [{transform_indices = @transform_0, window_bounds = array<i64: 8, 19>}, {pipeline_mode = #tpu.pipeline_mode<synchronous>, transform_indices = @transform_1, window_bounds = array<i64: 19, 10>}, {pipeline_mode = #tpu.pipeline_mode<synchronous>, transform_indices = @transform_2, window_bounds = array<i64: 1, 10>}, {transform_indices = @transform_3, window_bounds = array<i64: 8, 10>}]} {
    %c0 = arith.constant 0 : index
    %c0_0 = arith.constant 0 : index
    %0 = vector.load %arg1[%c0, %c0_0] : memref<8x19xbf16, #tpu.memory_space<vmem>>, vector<8x19xbf16>
    %c0_1 = arith.constant 0 : index
    %c0_2 = arith.constant 0 : index
    %1 = vector.load %arg2[%c0_1, %c0_2] : memref<19x10xbf16, #tpu.memory_space<vmem>>, vector<19x10xbf16>
    %cst = arith.constant dense<0.000000e+00> : vector<8x10xf32>
    %2 = tpu.matmul %0, %1, %cst {dimension_numbers = #tpu.dot_dimension_numbers<[1], [0], [0], [1], [0, 0, 1, 1], [], []>} : vector<8x19xbf16>, vector<19x10xbf16>, vector<8x10xf32> -> vector<8x10xf32>
    %c0_3 = arith.constant 0 : index
    %c0_4 = arith.constant 0 : index
    %3 = vector.load %arg3[%c0_3, %c0_4] : memref<1x10xf32, #tpu.memory_space<vmem>>, vector<1x10xf32>
    %4 = vector.broadcast %3 : vector<1x10xf32> to vector<8x10xf32>
    %5 = arith.addf %2, %4 : vector<8x10xf32>
    %c0_5 = arith.constant 0 : index
    %c0_6 = arith.constant 0 : index
    %6 = vector.load %arg4[%c0_5, %c0_6] : memref<8x10xf32, #tpu.memory_space<vmem>>, vector<8x10xf32>
    tpu.vector_store %arg4[%c0_5, %c0_6], %5 {strides = array<i32>} : memref<8x10xf32, #tpu.memory_space<vmem>>, vector<8x10xf32>,
    return
  }
  func.func @transform_0(%arg0: i32) -> (i32, i32) {
    %c0_i32 = arith.constant 0 : i32
    %c0_i32_0 = arith.constant 0 : i32
    return %arg0, %c0_i32 : i32, i32
  }
  func.func @transform_1(%arg0: i32) -> (i32, i32) {
    %c0_i32 = arith.constant 0 : i32
    %c0_i32_0 = arith.constant 0 : i32
    %c0_i32_1 = arith.constant 0 : i32
    return %c0_i32, %c0_i32_0 : i32, i32
  }
  func.func @transform_2(%arg0: i32) -> (i32, i32) {
    %c0_i32 = arith.constant 0 : i32
    %c0_i32_0 = arith.constant 0 : i32
    %c0_i32_1 = arith.constant 0 : i32
    return %c0_i32, %c0_i32_0 : i32, i32
  }
  func.func @transform_3(%arg0: i32) -> (i32, i32) {
    %c0_i32 = arith.constant 0 : i32
    %c0_i32_0 = arith.constant 0 : i32
    return %arg0, %c0_i32 : i32, i32
  }
}

</mosaic_0001>

<bundles_post_ra>
// kernel: tpu_custom_call.1
= control target key start
LH: loop header
LB: loop body
LE: loop exit
PB: predicated region body
PF: predicated region fallthrough
CT: control target
= control target key end

     0   :  { %vm37_vm0 = vcmask 1040384   ;;  %vm38_vm1 = vcmask 1041408   ;;  %v110_v2 = vmov 65535   ;;  %s147_s0 = inlined_call_operand.vmem [shape: bf16[8,19], index: 0, kind: input, shape index: {}]   ;;  %s148_s1 = inlined_call_operand.vmem [shape: bf16[19,10], index: 1, kind: input, shape index: {}]   ;;  %s149_s2 = inlined_call_operand.vmem [shape: f32[1,10], index: 2, kind: input, shape index: {}]   ;;  %s150_s3 = inlined_call_operand.hbm [shape: f32[8,10], index: 3, kind: output, shape index: {}]  }
   0x1   :  { %v19_v0 = vld [vmem:[%s148_s1 + $0x8] sm:$0x3]  ;;  %v39_v3 = vsel %vm37_vm0, 4294967295, %v110_v2 }
   0x2   :  { %v29_v1 = vunpack.c.l.b16 %v19_v0  ;;  %v40_v4 = vsel %vm38_vm1, %v39_v3, 0 }
   0x3   :  { %8 = vsyncpa [#allocation3], 0  ;;  %v80_v7 = vld [vmem:[%s148_s1] sm:$0xff]  ;;  %vm33_vm2 = vcmask 154624   ;;  %s111_s20 = smov [#allocation2]   ;;  %s66_s24 = sshll.u32 %s150_s3, 4  ;;  %s67_s24 = int_to_ptr.hbm [resolvable:$true] %s66_s24 }
   0x4   :  { %v31_v5 = vpack.c.b16 %v29_v1, %v29_v1  ;;  %v16_v8 = vld [vmem:[%s147_s0] sm:$0xf]  ;;  %s64_s21 = sshll.u32 %s111_s20, 4  ;;  %vm57_vm3 = vcmask 80896   ;;  %s65_s21 = int_to_ptr.vmem [resolvable:$true] %s64_s21 }
   0x5   :  { %v83_v9 = vld [vmem:[%s149_s2] ss:$0 sm:$0xff] }
   0x6   :  { %v42_v6 = vand.u32 %v40_v4, %v31_v5 }
   0x8   :  { %50 = vmatpush.bf16.msra.mxu0 %v42_v6 }
   0xc   :  { %51 = vmatpush.bf16.msra.mxu0 %v80_v7 }
   0xf   :  { %79 = vmatmul.msk.bf16.vlgmr.msra.gmra.mxu0 %vm33_vm2, %v16_v8 }
  0x8c   :  { %v53_v10 = vpop.f32.mrf.mxu0 }
  0x8d   :  { %v54_v11 = vadd.f32 %v83_v9, %v53_v10 }
  0x8f   :  { %58 = vst.msk [vmem:[#allocation2] sm:$0xff] %vm57_vm3, %v54_v11 }
  0x90   :  { %69 = dma.vmem_to_hbm [thread:$0]  %s65_s21, 128, %s67_s24, [#allocation3]  }
  0x94   :  { %v55_v12 = vpop.f32.mrf.mxu0 }
  0x95   :  { %108 = dma.done.wait [#allocation3], 128  }
  0x96   :  { %109 = vsyncadd [#allocation3], 4294967168 }
  0x97   :  { %74 = vsyncpa [#allocation3], 1 }

</bundles_post_ra>
